<compile_context>
chip_gen: v6e
topology: v6e:2x2x1
jax: 0.10.0
libtpu: 0.0.40
codegen_flags: <defaults>
</compile_context>

<pallas_src>
import jax
import jax.numpy as jnp
from jax.experimental import pallas as pl
from jax.experimental.pallas import tpu as pltpu

FEAT_DIM = 64 * 2      # 64 * widen_factor
NUM_CLASSES = 10
C_PAD = 128            # lane-dense padded class dimension


def _linear_kernel(x_ref, w_ref, b_ref, o_ref):
    # x_ref: [TB, D] bf16, w_ref: [D, C_PAD] bf16, b_ref: [1, C_PAD] f32
    acc = jnp.dot(x_ref[...], w_ref[...], preferred_element_type=jnp.float32)
    o_ref[...] = (acc + b_ref[...]).astype(o_ref.dtype)


def linear_classifier(features, weight, bias, *, block_b=512):
    """features: [B, D] f32; weight: [C, D] (PyTorch convention); bias: [C].
    Returns logits [B, C] in float32."""
    B, D = features.shape
    C = weight.shape[0]

    # ---- lane-dense padding of the class dimension (10 -> 128) ----
    w_t = jnp.zeros((D, C_PAD), dtype=weight.dtype).at[:, :C].set(weight.T)
    b_pad = jnp.zeros((1, C_PAD), dtype=jnp.float32).at[:, :C].set(
        bias.astype(jnp.float32))

    # ---- bf16 streaming inputs, f32 accumulate inside the kernel ----
    x_bf = features.astype(jnp.bfloat16)
    w_bf = w_t.astype(jnp.bfloat16)

    # ---- batch tiling: TB multiple of 8, capped at block_b; pad tail rows ----
    tb = min(block_b, ((B + 7) // 8) * 8)
    tb = max(tb, 8)
    n_tiles = pl.cdiv(B, tb)
    b_padded = n_tiles * tb
    if b_padded != B:
        x_bf = jnp.pad(x_bf, ((0, b_padded - B), (0, 0)))

    out = pl.pallas_call(
        _linear_kernel,
        out_shape=jax.ShapeDtypeStruct((b_padded, C_PAD), jnp.float32),
        grid_spec=pltpu.PrefetchScalarGridSpec(
            num_scalar_prefetch=0,
            grid=(n_tiles,),
            in_specs=[
                pl.BlockSpec((tb, D), lambda i: (i, 0)),      # feature rows
                pl.BlockSpec((D, C_PAD), lambda i: (0, 0)),   # weight (constant)
                pl.BlockSpec((1, C_PAD), lambda i: (0, 0)),   # bias   (constant)
            ],
            out_specs=pl.BlockSpec((tb, C_PAD), lambda i: (i, 0)),
        ),
        compiler_params=pltpu.CompilerParams(
            dimension_semantics=("parallel",)),
    )(x_bf, w_bf, b_pad)

    return out[:B, :C]


if __name__ == "__main__":
    key = jax.random.PRNGKey(0)
    k_x, k_w, k_b = jax.random.split(key, 3)

    batch = 8
    # "features" are what WideResNetEncoder would emit: [B, 128]
    features = jax.random.normal(k_x, (batch, FEAT_DIM), dtype=jnp.float32)

    # Deterministic parameter init mimicking nn.Linear default
    # (uniform in [-1/sqrt(fan_in), 1/sqrt(fan_in)]).
    bound = 1.0 / (FEAT_DIM ** 0.5)
    weight = jax.random.uniform(k_w, (NUM_CLASSES, FEAT_DIM),
                                minval=-bound, maxval=bound, dtype=jnp.float32)
    bias = jax.random.uniform(k_b, (NUM_CLASSES,),
                              minval=-bound, maxval=bound, dtype=jnp.float32)

    logits = linear_classifier(features, weight, bias)
    jax.block_until_ready(logits)

    # Reference: same bf16-cast inputs, f32 accumulate (matches kernel math).
    x_ref = features.astype(jnp.bfloat16).astype(jnp.float32)
    w_ref = weight.astype(jnp.bfloat16).astype(jnp.float32)
    ref = x_ref @ w_ref.T + bias

    assert logits.shape == (batch, NUM_CLASSES)
    assert jnp.allclose(logits, ref, atol=1e-3, rtol=1e-3)

    print("KERNEL_OK")
</pallas_src>

<mosaic_0001>
module attributes {stable_mosaic.version = 11 : i64} {
  func.func @_linear_kernel(%arg0: i32, %arg1: memref<8x128xbf16, #tpu.memory_space<vmem>>, %arg2: memref<128x128xbf16, #tpu.memory_space<vmem>>, %arg3: memref<1x128xf32, #tpu.memory_space<vmem>>, %arg4: memref<8x128xf32, #tpu.memory_space<vmem>>) attributes {dimension_semantics = [#tpu.dimension_semantics<parallel>], iteration_bounds = array<i64: 1>, scalar_prefetch = 0 : i64, scratch_operands = 0 : i64, tpu.core_type = #tpu.core_type<tc>, window_params = [{transform_indices = @transform_0, window_bounds = array<i64: 8, 128>}, {pipeline_mode = #tpu.pipeline_mode<synchronous>, transform_indices = @transform_1, window_bounds = array<i64: 128, 128>}, {pipeline_mode = #tpu.pipeline_mode<synchronous>, transform_indices = @transform_2, window_bounds = array<i64: 1, 128>}, {transform_indices = @transform_3, window_bounds = array<i64: 8, 128>}]} {
    %c0 = arith.constant 0 : index
    %c0_0 = arith.constant 0 : index
    %0 = vector.load %arg1[%c0, %c0_0] : memref<8x128xbf16, #tpu.memory_space<vmem>>, vector<8x128xbf16>
    %c0_1 = arith.constant 0 : index
    %c0_2 = arith.constant 0 : index
    %1 = vector.load %arg2[%c0_1, %c0_2] : memref<128x128xbf16, #tpu.memory_space<vmem>>, vector<128x128xbf16>
    %cst = arith.constant dense<0.000000e+00> : vector<8x128xf32>
    %2 = tpu.matmul %0, %1, %cst {dimension_numbers = #tpu.dot_dimension_numbers<[1], [0], [0], [1], [0, 0, 1, 1], [], []>} : vector<8x128xbf16>, vector<128x128xbf16>, vector<8x128xf32> -> vector<8x128xf32>
    %c0_3 = arith.constant 0 : index
    %c0_4 = arith.constant 0 : index
    %3 = vector.load %arg3[%c0_3, %c0_4] : memref<1x128xf32, #tpu.memory_space<vmem>>, vector<1x128xf32>
    %4 = vector.broadcast %3 : vector<1x128xf32> to vector<8x128xf32>
    %5 = arith.addf %2, %4 : vector<8x128xf32>
    %c0_5 = arith.constant 0 : index
    %c0_6 = arith.constant 0 : index
    %6 = vector.load %arg4[%c0_5, %c0_6] : memref<8x128xf32, #tpu.memory_space<vmem>>, vector<8x128xf32>
    tpu.vector_store %arg4[%c0_5, %c0_6], %5 {strides = array<i32>} : memref<8x128xf32, #tpu.memory_space<vmem>>, vector<8x128xf32>,
    return
  }
  func.func @transform_0(%arg0: i32) -> (i32, i32) {
    %c0_i32 = arith.constant 0 : i32
    %c0_i32_0 = arith.constant 0 : i32
    return %arg0, %c0_i32 : i32, i32
  }
  func.func @transform_1(%arg0: i32) -> (i32, i32) {
    %c0_i32 = arith.constant 0 : i32
    %c0_i32_0 = arith.constant 0 : i32
    %c0_i32_1 = arith.constant 0 : i32
    return %c0_i32, %c0_i32_0 : i32, i32
  }
  func.func @transform_2(%arg0: i32) -> (i32, i32) {
    %c0_i32 = arith.constant 0 : i32
    %c0_i32_0 = arith.constant 0 : i32
    %c0_i32_1 = arith.constant 0 : i32
    return %c0_i32, %c0_i32_0 : i32, i32
  }
  func.func @transform_3(%arg0: i32) -> (i32, i32) {
    %c0_i32 = arith.constant 0 : i32
    %c0_i32_0 = arith.constant 0 : i32
    return %arg0, %c0_i32 : i32, i32
  }
}

</mosaic_0001>

<bundles_post_ra>
// kernel: tpu_custom_call.1
= control target key start
LH: loop header
LB: loop body
LE: loop exit
PB: predicated region body
PF: predicated region fallthrough
CT: control target
= control target key end

     0   :  { %8 = vsyncpa [#allocation3], 0  ;;  %s329_s0 = inlined_call_operand.hbm [shape: bf16[8,128], index: 0, kind: input, shape index: {}]   ;;  %s330_s1 = inlined_call_operand.hbm [shape: bf16[128,128], index: 1, kind: input, shape index: {}]   ;;  %s331_s2 = inlined_call_operand.vmem [shape: f32[1,128], index: 2, kind: input, shape index: {}]   ;;  %s332_s3 = inlined_call_operand.hbm [shape: f32[8,128], index: 3, kind: output, shape index: {}]  }
   0x1   :  { %9 = vsyncpa [#allocation6], 0 }
   0x2   :  { %10 = vsyncpa [#allocation4], 0  ;;  %s290_s12 = smov [#allocation2]   ;;  %s291_s14 = smov [#allocation5]  }
   0x3   :  { %s17_s13 = sshll.u32 %s290_s12, 4  ;;  %s26_s15 = sshll.u32 %s291_s14, 4  ;;  %s18_s13 = int_to_ptr.vmem [resolvable:$true] %s17_s13  ;;  %s27_s15 = int_to_ptr.vmem [resolvable:$true] %s26_s15 }
   0x4   :  { %s232_s16 = scalar_lea.vmem %s18_s13, 64  ;;  %p237_p1 = scmp.lt.s32.totalorder %s18_s13, %s18_s13 }
   0x5   :  { %p233_p0 = scmp.ne.s32.totalorder %s18_s13, %s232_s16  ;;  %p238_p2 = scmp.lt.s32.totalorder %s232_s16, %s232_s16 }
   0x7   :  { %p239_p3 = por %p238_p2, %p237_p1 }
   0x9   :  { %p240_p4 = pnand %p239_p3, %p233_p0 }
   0xb   :  { %243 = shalt.err (!%p240_p4)
}
   0xc   :  { %20 = dma.hbm_to_vmem [thread:$0]  %s329_s0, 64, %s18_s13, [#allocation3]  }
   0xd   :  { %s252_s19 = scalar_lea.vmem %s27_s15, 1024  ;;  %p257_p6 = scmp.lt.s32.totalorder %s27_s15, %s27_s15 }
   0xe   :  { %p253_p5 = scmp.ne.s32.totalorder %s27_s15, %s252_s19  ;;  %p258_p7 = scmp.lt.s32.totalorder %s252_s19, %s252_s19 }
  0x10   :  { %p259_p8 = por %p258_p7, %p257_p6 }
  0x12   :  { %p260_p9 = pnand %p259_p8, %p253_p5 }
  0x14   :  { %263 = shalt.err (!%p260_p9)
}
  0x15   :  { %s292_s20 = smov 64   ;;  %s293_s21 = smov 4  }
  0x16   :  { %32 = dma.hbm_to_vmem [thread:$0]  %s330_s1, 1024, %s27_s15, [#allocation6], %s292_s20, %s292_s20, %s293_s21  }
  0x17   :  { %284 = dma.done.wait [#allocation3], 64  }
  0x18   :  { %285 = vsyncadd [#allocation3], 4294967232 }
  0x19   :  { %286 = dma.done.wait [#allocation6], 1024  }
  0x1a   :  { %287 = vsyncadd [#allocation6], 4294966272  ;;  %v294_v0 = vmov 0.0   ;;  %vm295_vm0 = vmmov 0   ;;  %v216_v1 = vld [vmem:[#allocation5 + $0x38] sm:$0xff]   ;;  %v217_v2 = vld [vmem:[#allocation5 + $0x30] sm:$0xff]  }
  0x1b   :  { %189 = vmatprep.subr.bf16.mxu0 %v294_v0  ;;  %205 = vmatprep.mubr.msk.bf16.mxu0 %vm295_vm0, %v294_v0  ;;  %v218_v3 = vld [vmem:[#allocation5 + $0x28] sm:$0xff]   ;;  %v219_v4 = vld [vmem:[#allocation5 + $0x20] sm:$0xff]   ;;  %v220_v5 = vld [vmem:[#allocation5 + $0x18] sm:$0xff]   ;;  %s296_s24 = smov [#allocation7]  }
  0x1c   :  { %190 = vmatpush3.bf16.msra.mxu0 %v216_v1  ;;  %v221_v6 = vld [vmem:[#allocation5 + $0x10] sm:$0xff]   ;;  %v222_v7 = vld [vmem:[#allocation5 + $0x8] sm:$0xff]   ;;  %v223_v8 = vld [vmem:[#allocation5] sm:$0xff]   ;;  %s161_s25 = sshll.u32 %s296_s24, 4  ;;  %s162_s25 = int_to_ptr.vmem [resolvable:$true] %s161_s25 }
  0x1d   :  { %191 = vmatprep.subr.bf16.mxu0 %v294_v0  ;;  %v42_v9 = vld [vmem:[#allocation2] sm:$0xf]  ;;  %s264_s26 = scalar_lea.vmem %s162_s25, 128  ;;  %p269_p11 = scmp.lt.s32.totalorder %s162_s25, %s162_s25 }
  0x1e   :  { %v171_v10 = vld [vmem:[%s331_s2] ss:$0 sm:$0xff]  ;;  %p265_p10 = scmp.ne.s32.totalorder %s162_s25, %s264_s26  ;;  %p270_p12 = scmp.lt.s32.totalorder %s264_s26, %s264_s26 }
  0x20   :  { %192 = vmatpush3.bf16.msra.mxu0 %v217_v2  ;;  %p271_p13 = por %p270_p12, %p269_p11 }
  0x21   :  { %193 = vmatprep.subr.bf16.mxu0 %v294_v0 }
  0x22   :  { %p272_p0 = pnand %p271_p13, %p265_p10 }
  0x24   :  { %194 = vmatpush3.bf16.msra.mxu0 %v218_v3 }
  0x25   :  { %195 = vmatprep.subr.bf16.mxu0 %v294_v0 }
  0x28   :  { %196 = vmatpush3.bf16.msra.mxu0 %v219_v4 }
  0x29   :  { %197 = vmatprep.subr.bf16.mxu0 %v294_v0 }
  0x2c   :  { %198 = vmatpush3.bf16.msra.mxu0 %v220_v5 }
  0x2d   :  { %199 = vmatprep.subr.bf16.mxu0 %v294_v0 }
  0x30   :  { %200 = vmatpush3.bf16.msra.mxu0 %v221_v6 }
  0x31   :  { %201 = vmatprep.subr.bf16.mxu0 %v294_v0 }
  0x34   :  { %202 = vmatpush3.bf16.msra.mxu0 %v222_v7 }
  0x35   :  { %203 = vmatprep.subr.bf16.mxu0 %v294_v0 }
  0x38   :  { %204 = vmatpush3.bf16.msra.mxu0 %v223_v8 }
  0x3b   :  { %206 = vmatmul.mubr.bf16.vlgmr.msra.gmra.mxu0 %v42_v9 }
  0xfb   :  { %v148_v11 = vpop.f32.mrf.mxu0 }
  0xfc   :  { %v149_v12 = vadd.f32 %v171_v10, %v148_v11 }
  0xfd   :  { %v207_v13 = vpop.f32.mrf.mxu0 }
  0xfe   :  { %154 = vst [vmem:[#allocation7] sm:$0xff] %v149_v12 }
  0xff   :  { %v151_v14 = vpop.f32.mrf.mxu0 }
 0x100   :  { %275 = shalt.err (!%p272_p0)
}
 0x101   :  { %164 = dma.vmem_to_hbm [thread:$0]  %s162_s25, 128, %s332_s3, [#allocation4]   ;;  %v208_v15 = vpop.f32.mrf.mxu0 }
 0x102   :  { %288 = dma.done.wait [#allocation4], 128  }
 0x103   :  { %289 = vsyncadd [#allocation4], 4294967168 }
 0x104   :  { %168 = vsyncpa [#allocation3], 1 }
 0x105   :  { %169 = vsyncpa [#allocation6], 1 }
 0x106   :  { %170 = vsyncpa [#allocation4], 1 }

</bundles_post_ra>
